<compile_context>
chip_gen: v7x
topology: tpu7x:2x2x1
jax: 0.10.0
libtpu: 0.0.40
codegen_flags: <defaults>
</compile_context>

<pallas_src>
import functools

import jax
import jax.numpy as jnp
from jax.experimental import pallas as pl
from jax.experimental.pallas import tpu as pltpu


def _repeat_kernel(x_ref, o_ref, *, groups: int, feat: int):
    # One grid step: fan the (tb, F) input tile out into `groups` adjacent
    # feature slabs of the (tb, groups*F) output block.  Offsets j*feat are
    # compile-time constants -> straight vld -> vst stream per repeat
    # (unmasked stores when F is a multiple of 128).  Re-reading x_ref per
    # repeat keeps vreg pressure flat (vld slots far exceed HBM bandwidth).
    for j in range(groups):
        o_ref[:, j * feat:(j + 1) * feat] = x_ref[...]


def _vmem_budget():
    """(scoped_vmem_limit_bytes, per_step_working_set_bytes) from HW info."""
    try:
        cap = int(getattr(pltpu.get_tpu_info(), "vmem_capacity_bytes"))
    except Exception:
        cap = 64 * 1024 * 1024  # conservative (v7x per-TC VMEM)
    # ~80% of physical as the scoped limit, capped well below 128 MiB parts'
    # ceiling; half of the limit as the double-buffered tile working set.
    vmem_limit = min(int(cap * 0.80), 110 * 1024 * 1024)
    budget = vmem_limit // 2
    return vmem_limit, budget


def output_reuse(x: jax.Array, n_repeats: int) -> jax.Array:
    """Pallas equivalent of OutputReuse(n_repeats).forward(x) for 2-D x."""
    assert x.ndim == 2, "OutputReuse expects a 2-D (batch, features) input"
    assert n_repeats >= 1
    B, F = x.shape
    itemsize = jnp.dtype(x.dtype).itemsize

    # Sublane granularity of the 2nd-to-last dim: 8 (f32), 16 (bf16), 32 (i8).
    sublane = max(8, 32 // itemsize)

    vmem_limit, budget = _vmem_budget()

    # --- choose the repeat-group size G (output block is (tb, G*F)) -------
    def fits(g, rows):
        # double-buffered input (rows, F) + output (rows, g*F)
        return 2 * rows * F * (1 + g) * itemsize <= budget

    if F % 128 == 0:
        # Largest divisor of n_repeats whose output slab is still VMEM-sized
        # at the minimum (sublane) row tile.  Keeps every store lane-dense.
        G = 1
        for g in range(n_repeats, 0, -1):
            if n_repeats % g == 0 and fits(g, sublane):
                G = g
                break
    else:
        # (8,128) rule: a partial-width output block would need G*F % 128 == 0,
        # so use the full output width (legal because it equals the array dim).
        G = n_repeats
        if not fits(G, sublane):
            # TODO(synk): feature-axis tiling for huge unaligned F; fall back.
            return jnp.tile(x, (1, n_repeats))
    grid_g = n_repeats // G

    # --- choose the batch tile tb ------------------------------------------
    tb = budget // max(2 * F * (1 + G) * itemsize, 1)
    if tb >= B:
        tb = B                                  # full dim: always a legal block
    else:
        tb = max(sublane, (tb // sublane) * sublane)
        # Prefer a tb that divides B evenly (avoids a masked final writeback).
        cand = tb
        while cand >= sublane:
            if B % cand == 0:
                tb = cand
                break
            cand -= sublane

    # v7x has 2 TensorCores: make sure the "parallel" grid has >= 2 steps
    # when the batch allows it, so a single giant tile doesn't serialize
    # onto one core.
    if pl.cdiv(B, tb) * grid_g == 1 and B >= 2 * sublane:
        half = pl.cdiv(B, 2)
        tb = ((half + sublane - 1) // sublane) * sublane
        tb = min(tb, B)

    grid_b = pl.cdiv(B, tb)
    kernel = functools.partial(_repeat_kernel, groups=G, feat=F)

    return pl.pallas_call(
        kernel,
        out_shape=jax.ShapeDtypeStruct((B, F * n_repeats), x.dtype),
        grid_spec=pltpu.PrefetchScalarGridSpec(
            num_scalar_prefetch=0,
            grid=(grid_b, grid_g),
            # Input: batch tile i of the (B, F) input, reused across groups j.
            in_specs=[pl.BlockSpec((tb, F), lambda i, j: (i, 0))],
            # Output: lane-dense (tb, G*F) slab for (batch tile i, group j).
            out_specs=pl.BlockSpec((tb, G * F), lambda i, j: (i, j)),
        ),
        compiler_params=pltpu.CompilerParams(
            # Disjoint output blocks, no carried state -> both axes parallel
            # (lets the two v7x TensorCores split the work).
            dimension_semantics=("parallel", "parallel"),
            vmem_limit_bytes=vmem_limit,
        ),
    )(x)


if __name__ == "__main__":
    # Small shapes consistent with a "quantum layer output" reuse:
    # batch=8, features=128 (lane-aligned), repeated 3 times.
    n_repeats = 3
    key = jax.random.PRNGKey(0)
    x = jax.random.normal(key, (8, 128), dtype=jnp.float32)

    out = output_reuse(x, n_repeats)
    out = jax.block_until_ready(out)

    # Correctness check against the pure-JAX reference of torch's repeat(1, R).
    ref = jnp.tile(x, (1, n_repeats))
    assert out.shape == (8, 128 * n_repeats), out.shape
    assert jnp.array_equal(out, ref), "mismatch vs jnp.tile reference"

    print("KERNEL_OK")
</pallas_src>

<mosaic_0001>
module attributes {stable_mosaic.version = 11 : i64} {
  func.func @_repeat_kernel(%arg0: i32, %arg1: i32, %arg2: memref<8x128xf32, #tpu.memory_space<vmem>>, %arg3: memref<8x384xf32, #tpu.memory_space<vmem>>) attributes {dimension_semantics = [#tpu.dimension_semantics<parallel>, #tpu.dimension_semantics<parallel>], iteration_bounds = array<i64: 1, 1>, scalar_prefetch = 0 : i64, scratch_operands = 0 : i64, tpu.core_type = #tpu.core_type<tc>, window_params = [{transform_indices = @transform_0, window_bounds = array<i64: 8, 128>}, {transform_indices = @transform_1, window_bounds = array<i64: 8, 384>}]} {
    %c0 = arith.constant 0 : index
    %c0_0 = arith.constant 0 : index
    %0 = vector.load %arg2[%c0, %c0_0] : memref<8x128xf32, #tpu.memory_space<vmem>>, vector<8x128xf32>
    %c0_1 = arith.constant 0 : index
    %c0_2 = arith.constant 0 : index
    %1 = vector.load %arg3[%c0_1, %c0_2] : memref<8x384xf32, #tpu.memory_space<vmem>>, vector<8x128xf32>
    tpu.vector_store %arg3[%c0_1, %c0_2], %0 {strides = array<i32>} : memref<8x384xf32, #tpu.memory_space<vmem>>, vector<8x128xf32>,
    %c0_3 = arith.constant 0 : index
    %c0_4 = arith.constant 0 : index
    %2 = vector.load %arg2[%c0_3, %c0_4] : memref<8x128xf32, #tpu.memory_space<vmem>>, vector<8x128xf32>
    %c0_5 = arith.constant 0 : index
    %c128 = arith.constant 128 : index
    %3 = vector.load %arg3[%c0_5, %c128] : memref<8x384xf32, #tpu.memory_space<vmem>>, vector<8x128xf32>
    tpu.vector_store %arg3[%c0_5, %c128], %2 {strides = array<i32>} : memref<8x384xf32, #tpu.memory_space<vmem>>, vector<8x128xf32>,
    %c0_6 = arith.constant 0 : index
    %c0_7 = arith.constant 0 : index
    %4 = vector.load %arg2[%c0_6, %c0_7] : memref<8x128xf32, #tpu.memory_space<vmem>>, vector<8x128xf32>
    %c0_8 = arith.constant 0 : index
    %c256 = arith.constant 256 : index
    %5 = vector.load %arg3[%c0_8, %c256] : memref<8x384xf32, #tpu.memory_space<vmem>>, vector<8x128xf32>
    tpu.vector_store %arg3[%c0_8, %c256], %4 {strides = array<i32>} : memref<8x384xf32, #tpu.memory_space<vmem>>, vector<8x128xf32>,
    return
  }
  func.func @transform_0(%arg0: i32, %arg1: i32) -> (i32, i32) {
    %c0_i32 = arith.constant 0 : i32
    %c0_i32_0 = arith.constant 0 : i32
    return %arg0, %c0_i32 : i32, i32
  }
  func.func @transform_1(%arg0: i32, %arg1: i32) -> (i32, i32) {
    %c0_i32 = arith.constant 0 : i32
    return %arg0, %arg1 : i32, i32
  }
}

</mosaic_0001>

<bundles_post_ra>
// kernel: tpu_custom_call.1
= control target key start
LH: loop header
LB: loop body
LE: loop exit
PB: predicated region body
PF: predicated region fallthrough
CT: control target
= control target key end

     0   :  { %6 = vsyncpa [#allocation3], 0  ;;  %s128_s0 = inlined_call_operand.hbm [shape: f32[8,128], index: 0, kind: input, shape index: {}]   ;;  %s129_s1 = inlined_call_operand.hbm [shape: f32[8,384], index: 1, kind: output, shape index: {}]  }
   0x1   :  { %7 = vsyncpa [#allocation4], 0  ;;  %s92_s6 = smov [#allocation2]   ;;  %s44_s10 = scalar_lea.hbm %s128_s0, 128 }
   0x2   :  { %s14_s7 = sshll.u32 %s92_s6, 4  ;;  %p45_p0 = scmp.ne.s32.totalorder %s128_s0, %s44_s10  ;;  %s15_s7 = int_to_ptr.vmem [resolvable:$true] %s14_s7 }
   0x3   :  { %p48_p1 = scmp.lt.u32.totalorder %s44_s10, %s128_s0 }
   0x5   :  { %p50_p2 = pnand %p48_p1, %p45_p0 }
   0x7   :  { %53 = shalt.err (!%p50_p2)
}
   0x8   :  { %s54_s15 = scalar_lea.vmem %s15_s7, 128  ;;  %p59_p4 = scmp.lt.s32.totalorder %s15_s7, %s15_s7 }
   0x9   :  { %p55_p3 = scmp.ne.s32.totalorder %s15_s7, %s54_s15  ;;  %p60_p5 = scmp.lt.s32.totalorder %s54_s15, %s54_s15 }
   0xb   :  { %p61_p6 = por %p60_p5, %p59_p4 }
   0xd   :  { %p62_p7 = pnand %p61_p6, %p55_p3 }
   0xf   :  { %65 = shalt.err (!%p62_p7)
}
  0x10   :  { %17 = dma.hbm_to_vmem [thread:$0]  %s128_s0, 128, %s15_s7, [#allocation3]  }
  0x11   :  { %88 = dma.done.wait [#allocation3], 128  }
  0x12   :  { %89 = vsyncadd [#allocation3], 4294967168  ;;  %s93_s18 = smov [#allocation5]   ;;  %v21_v0 = vld [vmem:[#allocation2] sm:$0xff] }
  0x13   :  { %s33_s19 = sshll.u32 %s93_s18, 4  ;;  %22 = vst [vmem:[#allocation5] sm:$0xff] %v21_v0  ;;  %24 = vst [vmem:[#allocation5 + $0x8] sm:$0xff] %v21_v0  ;;  %s34_s19 = int_to_ptr.vmem [resolvable:$true] %s33_s19 }
  0x14   :  { %26 = vst [vmem:[#allocation5 + $0x10] sm:$0xff] %v21_v0  ;;  %s66_s20 = scalar_lea.vmem %s34_s19, 384  ;;  %p71_p9 = scmp.lt.s32.totalorder %s34_s19, %s34_s19 }
  0x15   :  { %p67_p8 = scmp.ne.s32.totalorder %s34_s19, %s66_s20  ;;  %p72_p10 = scmp.lt.s32.totalorder %s66_s20, %s66_s20 }
  0x17   :  { %p73_p11 = por %p72_p10, %p71_p9 }
  0x19   :  { %p74_p12 = pnand %p73_p11, %p67_p8 }
  0x1b   :  { %77 = shalt.err (!%p74_p12)
}
  0x1c   :  { %s78_s0 = scalar_lea.hbm %s129_s1, 384 }
  0x1d   :  { %p79_p13 = scmp.ne.s32.totalorder %s129_s1, %s78_s0  ;;  %p82_p0 = scmp.lt.u32.totalorder %s78_s0, %s129_s1 }
  0x1f   :  { %p84_p1 = pnand %p82_p0, %p79_p13 }
  0x21   :  { %87 = shalt.err (!%p84_p1)
}
  0x22   :  { %36 = dma.vmem_to_hbm [thread:$0]  %s34_s19, 384, %s129_s1, [#allocation4]  }
  0x23   :  { %90 = dma.done.wait [#allocation4], 384  }
  0x24   :  { %91 = vsyncadd [#allocation4], 4294966912 }
  0x25   :  { %40 = vsyncpa [#allocation3], 1 }
  0x26   :  { %41 = vsyncpa [#allocation4], 1 }

</bundles_post_ra>
